<compile_context>
chip_gen: v6e
topology: v6e:2x2x1
jax: 0.10.0
libtpu: 0.0.40
codegen_flags: <defaults>
</compile_context>

<pallas_src>
import numpy as np
import jax
import jax.numpy as jnp
from jax import lax
from jax.experimental import pallas as pl
from jax.experimental.pallas import tpu as pltpu  # noqa: F401  (TPU backend)

EPS = 1e-5
LANES = 128


def _pad8(n):
    return -(-n // 8) * 8


# --------------------------- weight-slab layout ------------------------------

def slab_layout(B, L, N, P, F, nb, E):
    """Static (row_offset, rows, cols) for every packed weight segment."""
    BN, BF = B * N, B * F
    entries = [("rw", (1, BN)), ("rb", (1, BN))]
    for i in range(nb):
        entries += [(f"wt{i}", (L, L)), (f"bt{i}", (L, 1)),
                    (f"w1{i}", (BN, BF)), (f"b1{i}", (1, BF)),
                    (f"w2{i}", (BF, BN)), (f"b2{i}", (1, BN))]
    entries += [("wlin", (P, L)), ("blin", (P, 1)),
                ("e1", (N, E)), ("e2", (N, E)),
                ("wdg", (P, P)), ("bdg", (P, 1)),
                ("wg", (P, 2 * P)), ("bg", (P, 1))]
    offs, r = {}, 0
    for name, (h, w) in entries:
        assert w <= LANES, (name, w)
        offs[name] = (r, h, w)
        r += _pad8(h)                 # keep every segment (8,128)-tile aligned
    return offs, r


def pack_params(params, B, L, N, P, F, nb, E):
    """Pack all weights into a single (R, 128) f32 slab (done once, host-side)."""
    offs, R = slab_layout(B, L, N, P, F, nb, E)
    slab = np.zeros((R, LANES), np.float32)

    def put(name, a):
        a = np.asarray(a, np.float32)
        r, h, w = offs[name]
        assert a.shape == (h, w), (name, a.shape, (h, w))
        slab[r:r + h, :w] = a

    def block_diag(a):                # kron(I_B, a)
        h, w = a.shape
        out = np.zeros((B * h, B * w), np.float32)
        for b in range(B):
            out[b * h:(b + 1) * h, b * w:(b + 1) * w] = a
        return out

    put("rw", np.tile(np.asarray(params["revin_w"]), (1, B)))
    put("rb", np.tile(np.asarray(params["revin_b"]), (1, B)))
    for i in range(nb):
        put(f"wt{i}", params["rb_wt"][i])
        put(f"bt{i}", params["rb_bt"][i])
        put(f"w1{i}", block_diag(np.asarray(params["rb_w1"][i])))
        put(f"b1{i}", np.tile(np.asarray(params["rb_b1"][i]), (1, B)))
        put(f"w2{i}", block_diag(np.asarray(params["rb_w2"][i])))
        put(f"b2{i}", np.tile(np.asarray(params["rb_b2"][i]), (1, B)))
    put("wlin", params["w_lin_t"])
    put("blin", params["b_lin"])
    put("e1", params["e1"])
    put("e2", params["e2"])
    put("wdg", params["w_dg_t"])
    put("bdg", params["b_dg"])
    put("wg", np.concatenate([np.asarray(params["wg1_t"]),
                              np.asarray(params["wg2_t"])], axis=1))
    put("bg", params["bg"])
    return jnp.asarray(slab)


# ------------------------------ fused forward --------------------------------

def make_graphmlp_forward(B, L, N, P, F, nb, E):
    offs, _ = slab_layout(B, L, N, P, F, nb, E)
    BN = B * N
    f32 = jnp.float32

    def view(ref, name):
        r, h, w = offs[name]
        return ref[r:r + h, :w]       # static, tile-aligned view (cheap load)

    def kernel(x_ref, w_ref, o_ref):
        h = x_ref[...]                                   # (L, B*N)
        rw = view(w_ref, "rw")                           # (1, B*N)
        rb = view(w_ref, "rb")                           # (1, B*N)

        # ---- RevIN 'norm': per-(batch,node) stats over the time axis ----
        mean = jnp.mean(h, axis=0, keepdims=True)
        var = jnp.mean((h - mean) ** 2, axis=0, keepdims=True)
        std = jnp.sqrt(var + EPS)
        h = ((h - mean) / std) * rw + rb                 # exact division

        # ---- ResBlocks (unrolled; batch handled via block-diag weights) ----
        for i in range(nb):
            # temporal mixing (Linear over time acts from the left)
            t = jnp.maximum(
                jnp.dot(view(w_ref, f"wt{i}"), h, preferred_element_type=f32)
                + view(w_ref, f"bt{i}"), 0.0)
            h = h + t
            # per-node feature MLP: N -> F -> N  (block-diag over batch)
            z = jnp.maximum(
                jnp.dot(h, view(w_ref, f"w1{i}"), preferred_element_type=f32)
                + view(w_ref, f"b1{i}"), 0.0)            # (L, B*F)
            z = (jnp.dot(z, view(w_ref, f"w2{i}"), preferred_element_type=f32)
                 + view(w_ref, f"b2{i}"))                # (L, B*N)
            h = h + z

        # ---- prediction linear over time: (P, L) @ (L, B*N) ----
        y = (jnp.dot(view(w_ref, "wlin"), h, preferred_element_type=f32)
             + view(w_ref, "blin"))                      # (P, B*N)

        # ---- RevIN 'denorm' (exact division) ----
        y = (y - rb) / rw * std + mean
        x1 = y                                           # (P, B*N)

        # ---- adaptive adjacency softmax(relu(E1 E2^T)), batch-independent ----
        logits = jnp.maximum(
            lax.dot_general(view(w_ref, "e1"), view(w_ref, "e2"),
                            (((1,), (1,)), ((), ())),
                            preferred_element_type=f32), 0.0)       # (N, N)
        logits = logits - jnp.max(logits, axis=-1, keepdims=True)
        ez = jnp.exp(logits)
        adj = ez * pl.reciprocal(jnp.sum(ez, axis=-1, keepdims=True),
                                 approx=True)                       # row softmax

        # ---- graph conv over the node axis (per-batch static lane slices) ----
        parts = []
        for b in range(B):
            xb = x1[:, b * N:(b + 1) * N]                           # (P, N)
            parts.append(lax.dot_general(xb, adj, (((1,), (1,)), ((), ())),
                                         preferred_element_type=f32))
        hg = jnp.concatenate(parts, axis=1)                         # (P, B*N)
        x2 = jnp.maximum(
            jnp.dot(view(w_ref, "wdg"), hg, preferred_element_type=f32)
            + view(w_ref, "bdg"), 0.0)                              # (P, B*N)

        # ---- gating: single fused (P, 2P) @ (2P, B*N) matmul ----
        xc = jnp.concatenate([x1, x2], axis=0)                      # (2P, B*N)
        g = jax.nn.sigmoid(
            jnp.dot(view(w_ref, "wg"), xc, preferred_element_type=f32)
            + view(w_ref, "bg"))                                    # (P, B*N)
        o_ref[...] = g * x1 + (1.0 - g) * x2

    def forward(x, slab):
        # Layout plumbing only: put batch on the lane axis next to nodes.
        xT = jnp.transpose(x[..., 0], (1, 0, 2)).reshape(L, BN)     # (L, B*N)
        out = pl.pallas_call(
            kernel,
            out_shape=jax.ShapeDtypeStruct((P, BN), f32),
        )(xT, slab)
        # Back to the module's (B, num_nodes, pred_len) convention (512 B).
        return jnp.transpose(out.reshape(P, B, N), (1, 2, 0))

    return forward


# ---------------------------- deterministic params ---------------------------

def init_params(key, L, N, P, F, n_block, emb):
    def rn(k, shape, fan_in):
        return jax.random.normal(k, shape, jnp.float32) / jnp.sqrt(float(fan_in))

    keys = iter(jax.random.split(key, 6 * n_block + 16))
    rb_wt = jnp.stack([rn(next(keys), (L, L), L) for _ in range(n_block)])
    rb_bt = jnp.stack([rn(next(keys), (L, 1), L) for _ in range(n_block)])
    rb_w1 = jnp.stack([rn(next(keys), (N, F), N) for _ in range(n_block)])
    rb_b1 = jnp.stack([rn(next(keys), (1, F), N) for _ in range(n_block)])
    rb_w2 = jnp.stack([rn(next(keys), (F, N), F) for _ in range(n_block)])
    rb_b2 = jnp.stack([rn(next(keys), (1, N), F) for _ in range(n_block)])
    return {
        "revin_w": jnp.ones((1, N), jnp.float32),    # RevIN affine_weight init = 1
        "revin_b": jnp.zeros((1, N), jnp.float32),   # RevIN affine_bias  init = 0
        "rb_wt": rb_wt, "rb_bt": rb_bt,
        "rb_w1": rb_w1, "rb_b1": rb_b1,
        "rb_w2": rb_w2, "rb_b2": rb_b2,
        # Stored in PyTorch nn.Linear (out, in) orientation -> used as a
        # left-multiply in the (P, B*N) layout, no transpose needed at runtime.
        "w_lin_t": rn(next(keys), (P, L), L),
        "b_lin": rn(next(keys), (P, 1), L),
        "e1": rn(next(keys), (N, emb), emb),
        "e2": rn(next(keys), (N, emb), emb),
        "w_dg_t": rn(next(keys), (P, P), P),
        "b_dg": rn(next(keys), (P, 1), P),
        "wg1_t": rn(next(keys), (P, P), P),
        "wg2_t": rn(next(keys), (P, P), P),
        "bg": rn(next(keys), (P, 1), P),
    }


# ----------------------------------- main -------------------------------------

if __name__ == "__main__":
    B, L, N, P, F = 2, 8, 16, 4, 32   # batch, seq_len, num_nodes, pred_len, ff_dim
    n_block, emb = 2, 8

    key = jax.random.PRNGKey(0)
    k_x, k_p = jax.random.split(key)
    x = jax.random.normal(k_x, (B, L, N, 1), jnp.float32)
    params = init_params(k_p, L, N, P, F, n_block, emb)

    slab = pack_params(params, B, L, N, P, F, n_block, emb)   # one-time packing
    forward = jax.jit(make_graphmlp_forward(B, L, N, P, F, n_block, emb))

    out = forward(x, slab)
    out = jax.block_until_ready(out)
    assert out.shape == (B, N, P), out.shape
    assert bool(jnp.all(jnp.isfinite(out)))
    print("KERNEL_OK")
</pallas_src>

<mosaic_0001>
module attributes {stable_mosaic.version = 11 : i64} {
  func.func @kernel(%arg0: memref<8x32xf32, #tpu.memory_space<vmem>>, %arg1: memref<352x128xf32, #tpu.memory_space<vmem>>, %arg2: memref<4x32xf32, #tpu.memory_space<vmem>>) attributes {dimension_semantics = [], scalar_prefetch = 0 : i64, scratch_operands = 0 : i64, tpu.core_type = #tpu.core_type<tc>} {
    %c0 = arith.constant 0 : index
    %c0_0 = arith.constant 0 : index
    %0 = vector.load %arg0[%c0, %c0_0] : memref<8x32xf32, #tpu.memory_space<vmem>>, vector<8x32xf32>
    %c0_1 = arith.constant 0 : index
    %c0_2 = arith.constant 0 : index
    %1 = vector.load %arg1[%c0_1, %c0_2] : memref<352x128xf32, #tpu.memory_space<vmem>>, vector<1x32xf32>
    %c8 = arith.constant 8 : index
    %c0_3 = arith.constant 0 : index
    %2 = vector.load %arg1[%c8, %c0_3] : memref<352x128xf32, #tpu.memory_space<vmem>>, vector<1x32xf32>
    %cst = arith.constant dense<0.000000e+00> : vector<32xf32>
    %3 = vector.multi_reduction <add>, %0, %cst [0] : vector<8x32xf32> to vector<32xf32>
    %4 = vector.shape_cast %3 : vector<32xf32> to vector<1x32xf32>
    %cst_4 = arith.constant 8.000000e+00 : f32
    %5 = vector.broadcast %cst_4 : f32 to vector<1x32xf32>
    %6 = arith.divf %4, %5 : vector<1x32xf32>
    %7 = vector.broadcast %6 : vector<1x32xf32> to vector<8x32xf32>
    %8 = arith.subf %0, %7 : vector<8x32xf32>
    %9 = arith.mulf %8, %8 : vector<8x32xf32>
    %cst_5 = arith.constant dense<0.000000e+00> : vector<32xf32>
    %10 = vector.multi_reduction <add>, %9, %cst_5 [0] : vector<8x32xf32> to vector<32xf32>
    %11 = vector.shape_cast %10 : vector<32xf32> to vector<1x32xf32>
    %cst_6 = arith.constant 8.000000e+00 : f32
    %12 = vector.broadcast %cst_6 : f32 to vector<1x32xf32>
    %13 = arith.divf %11, %12 : vector<1x32xf32>
    %cst_7 = arith.constant 9.99999974E-6 : f32
    %14 = vector.broadcast %cst_7 : f32 to vector<1x32xf32>
    %15 = arith.addf %13, %14 : vector<1x32xf32>
    %16 = math.sqrt %15 : vector<1x32xf32>
    %17 = vector.broadcast %6 : vector<1x32xf32> to vector<8x32xf32>
    %18 = arith.subf %0, %17 : vector<8x32xf32>
    %19 = vector.broadcast %16 : vector<1x32xf32> to vector<8x32xf32>
    %20 = arith.divf %18, %19 : vector<8x32xf32>
    %21 = vector.broadcast %1 : vector<1x32xf32> to vector<8x32xf32>
    %22 = arith.mulf %20, %21 : vector<8x32xf32>
    %23 = vector.broadcast %2 : vector<1x32xf32> to vector<8x32xf32>
    %24 = arith.addf %22, %23 : vector<8x32xf32>
    %c16 = arith.constant 16 : index
    %c0_8 = arith.constant 0 : index
    %25 = vector.load %arg1[%c16, %c0_8] : memref<352x128xf32, #tpu.memory_space<vmem>>, vector<8x8xf32>
    %cst_9 = arith.constant dense<0.000000e+00> : vector<8x32xf32>
    %26 = tpu.matmul %25, %24, %cst_9 {dimension_numbers = #tpu.dot_dimension_numbers<[1], [0], [0], [1], [0, 0, 1, 1], [], []>} : vector<8x8xf32>, vector<8x32xf32>, vector<8x32xf32> -> vector<8x32xf32>
    %c24 = arith.constant 24 : index
    %c0_10 = arith.constant 0 : index
    %27 = vector.load %arg1[%c24, %c0_10] : memref<352x128xf32, #tpu.memory_space<vmem>>, vector<8x1xf32>
    %28 = vector.broadcast %27 : vector<8x1xf32> to vector<8x32xf32>
    %29 = arith.addf %26, %28 : vector<8x32xf32>
    %cst_11 = arith.constant 0.000000e+00 : f32
    %30 = vector.broadcast %cst_11 : f32 to vector<8x32xf32>
    %31 = arith.maximumf %29, %30 : vector<8x32xf32>
    %32 = arith.addf %24, %31 : vector<8x32xf32>
    %c32 = arith.constant 32 : index
    %c0_12 = arith.constant 0 : index
    %33 = vector.load %arg1[%c32, %c0_12] : memref<352x128xf32, #tpu.memory_space<vmem>>, vector<32x64xf32>
    %cst_13 = arith.constant dense<0.000000e+00> : vector<8x64xf32>
    %34 = tpu.matmul %32, %33, %cst_13 {dimension_numbers = #tpu.dot_dimension_numbers<[1], [0], [0], [1], [0, 0, 1, 1], [], []>} : vector<8x32xf32>, vector<32x64xf32>, vector<8x64xf32> -> vector<8x64xf32>
    %c64 = arith.constant 64 : index
    %c0_14 = arith.constant 0 : index
    %35 = vector.load %arg1[%c64, %c0_14] : memref<352x128xf32, #tpu.memory_space<vmem>>, vector<1x64xf32>
    %36 = vector.broadcast %35 : vector<1x64xf32> to vector<8x64xf32>
    %37 = arith.addf %34, %36 : vector<8x64xf32>
    %cst_15 = arith.constant 0.000000e+00 : f32
    %38 = vector.broadcast %cst_15 : f32 to vector<8x64xf32>
    %39 = arith.maximumf %37, %38 : vector<8x64xf32>
    %c72 = arith.constant 72 : index
    %c0_16 = arith.constant 0 : index
    %40 = vector.load %arg1[%c72, %c0_16] : memref<352x128xf32, #tpu.memory_space<vmem>>, vector<64x32xf32>
    %cst_17 = arith.constant dense<0.000000e+00> : vector<8x32xf32>
    %41 = tpu.matmul %39, %40, %cst_17 {dimension_numbers = #tpu.dot_dimension_numbers<[1], [0], [0], [1], [0, 0, 1, 1], [], []>} : vector<8x64xf32>, vector<64x32xf32>, vector<8x32xf32> -> vector<8x32xf32>
    %c136 = arith.constant 136 : index
    %c0_18 = arith.constant 0 : index
    %42 = vector.load %arg1[%c136, %c0_18] : memref<352x128xf32, #tpu.memory_space<vmem>>, vector<1x32xf32>
    %43 = vector.broadcast %42 : vector<1x32xf32> to vector<8x32xf32>
    %44 = arith.addf %41, %43 : vector<8x32xf32>
    %45 = arith.addf %32, %44 : vector<8x32xf32>
    %c144 = arith.constant 144 : index
    %c0_19 = arith.constant 0 : index
    %46 = vector.load %arg1[%c144, %c0_19] : memref<352x128xf32, #tpu.memory_space<vmem>>, vector<8x8xf32>
    %cst_20 = arith.constant dense<0.000000e+00> : vector<8x32xf32>
    %47 = tpu.matmul %46, %45, %cst_20 {dimension_numbers = #tpu.dot_dimension_numbers<[1], [0], [0], [1], [0, 0, 1, 1], [], []>} : vector<8x8xf32>, vector<8x32xf32>, vector<8x32xf32> -> vector<8x32xf32>
    %c152 = arith.constant 152 : index
    %c0_21 = arith.constant 0 : index
    %48 = vector.load %arg1[%c152, %c0_21] : memref<352x128xf32, #tpu.memory_space<vmem>>, vector<8x1xf32>
    %49 = vector.broadcast %48 : vector<8x1xf32> to vector<8x32xf32>
    %50 = arith.addf %47, %49 : vector<8x32xf32>
    %cst_22 = arith.constant 0.000000e+00 : f32
    %51 = vector.broadcast %cst_22 : f32 to vector<8x32xf32>
    %52 = arith.maximumf %50, %51 : vector<8x32xf32>
    %53 = arith.addf %45, %52 : vector<8x32xf32>
    %c160 = arith.constant 160 : index
    %c0_23 = arith.constant 0 : index
    %54 = vector.load %arg1[%c160, %c0_23] : memref<352x128xf32, #tpu.memory_space<vmem>>, vector<32x64xf32>
    %cst_24 = arith.constant dense<0.000000e+00> : vector<8x64xf32>
    %55 = tpu.matmul %53, %54, %cst_24 {dimension_numbers = #tpu.dot_dimension_numbers<[1], [0], [0], [1], [0, 0, 1, 1], [], []>} : vector<8x32xf32>, vector<32x64xf32>, vector<8x64xf32> -> vector<8x64xf32>
    %c192 = arith.constant 192 : index
    %c0_25 = arith.constant 0 : index
    %56 = vector.load %arg1[%c192, %c0_25] : memref<352x128xf32, #tpu.memory_space<vmem>>, vector<1x64xf32>
    %57 = vector.broadcast %56 : vector<1x64xf32> to vector<8x64xf32>
    %58 = arith.addf %55, %57 : vector<8x64xf32>
    %cst_26 = arith.constant 0.000000e+00 : f32
    %59 = vector.broadcast %cst_26 : f32 to vector<8x64xf32>
    %60 = arith.maximumf %58, %59 : vector<8x64xf32>
    %c200 = arith.constant 200 : index
    %c0_27 = arith.constant 0 : index
    %61 = vector.load %arg1[%c200, %c0_27] : memref<352x128xf32, #tpu.memory_space<vmem>>, vector<64x32xf32>
    %cst_28 = arith.constant dense<0.000000e+00> : vector<8x32xf32>
    %62 = tpu.matmul %60, %61, %cst_28 {dimension_numbers = #tpu.dot_dimension_numbers<[1], [0], [0], [1], [0, 0, 1, 1], [], []>} : vector<8x64xf32>, vector<64x32xf32>, vector<8x32xf32> -> vector<8x32xf32>
    %c264 = arith.constant 264 : index
    %c0_29 = arith.constant 0 : index
    %63 = vector.load %arg1[%c264, %c0_29] : memref<352x128xf32, #tpu.memory_space<vmem>>, vector<1x32xf32>
    %64 = vector.broadcast %63 : vector<1x32xf32> to vector<8x32xf32>
    %65 = arith.addf %62, %64 : vector<8x32xf32>
    %66 = arith.addf %53, %65 : vector<8x32xf32>
    %c272 = arith.constant 272 : index
    %c0_30 = arith.constant 0 : index
    %67 = vector.load %arg1[%c272, %c0_30] : memref<352x128xf32, #tpu.memory_space<vmem>>, vector<4x8xf32>
    %cst_31 = arith.constant dense<0.000000e+00> : vector<4x32xf32>
    %68 = tpu.matmul %67, %66, %cst_31 {dimension_numbers = #tpu.dot_dimension_numbers<[1], [0], [0], [1], [0, 0, 1, 1], [], []>} : vector<4x8xf32>, vector<8x32xf32>, vector<4x32xf32> -> vector<4x32xf32>
    %c280 = arith.constant 280 : index
    %c0_32 = arith.constant 0 : index
    %69 = vector.load %arg1[%c280, %c0_32] : memref<352x128xf32, #tpu.memory_space<vmem>>, vector<4x1xf32>
    %70 = vector.broadcast %69 : vector<4x1xf32> to vector<4x32xf32>
    %71 = arith.addf %68, %70 : vector<4x32xf32>
    %72 = vector.broadcast %2 : vector<1x32xf32> to vector<4x32xf32>
    %73 = arith.subf %71, %72 : vector<4x32xf32>
    %74 = vector.broadcast %1 : vector<1x32xf32> to vector<4x32xf32>
    %75 = arith.divf %73, %74 : vector<4x32xf32>
    %76 = vector.broadcast %16 : vector<1x32xf32> to vector<4x32xf32>
    %77 = arith.mulf %75, %76 : vector<4x32xf32>
    %78 = vector.broadcast %6 : vector<1x32xf32> to vector<4x32xf32>
    %79 = arith.addf %77, %78 : vector<4x32xf32>
    %c288 = arith.constant 288 : index
    %c0_33 = arith.constant 0 : index
    %80 = vector.load %arg1[%c288, %c0_33] : memref<352x128xf32, #tpu.memory_space<vmem>>, vector<16x8xf32>
    %c304 = arith.constant 304 : index
    %c0_34 = arith.constant 0 : index
    %81 = vector.load %arg1[%c304, %c0_34] : memref<352x128xf32, #tpu.memory_space<vmem>>, vector<16x8xf32>
    %cst_35 = arith.constant dense<0.000000e+00> : vector<16x16xf32>
    %82 = tpu.matmul %80, %81, %cst_35 {dimension_numbers = #tpu.dot_dimension_numbers<[1], [1], [0], [0], [0, 0, 1, 0], [], []>} : vector<16x8xf32>, vector<16x8xf32>, vector<16x16xf32> -> vector<16x16xf32>
    %cst_36 = arith.constant 0.000000e+00 : f32
    %83 = vector.broadcast %cst_36 : f32 to vector<16x16xf32>
    %84 = arith.maximumf %82, %83 : vector<16x16xf32>
    %cst_37 = arith.constant dense<0xFF800000> : vector<16xf32>
    %85 = vector.multi_reduction <maximumf>, %84, %cst_37 [1] : vector<16x16xf32> to vector<16xf32>
    %86 = vector.shape_cast %85 : vector<16xf32> to vector<16x1xf32>
    %87 = vector.broadcast %86 : vector<16x1xf32> to vector<16x16xf32>
    %88 = arith.subf %84, %87 : vector<16x16xf32>
    %89 = math.exp %88 : vector<16x16xf32>
    %cst_38 = arith.constant dense<0.000000e+00> : vector<16xf32>
    %90 = vector.multi_reduction <add>, %89, %cst_38 [1] : vector<16x16xf32> to vector<16xf32>
    %91 = vector.shape_cast %90 : vector<16xf32> to vector<16x1xf32>
    %92 = tpu.reciprocal %91 {approx = true} : vector<16x1xf32> -> vector<16x1xf32>
    %93 = vector.broadcast %92 : vector<16x1xf32> to vector<16x16xf32>
    %94 = arith.mulf %89, %93 : vector<16x16xf32>
    %95 = vector.extract_strided_slice %79 {offsets = [0, 0], sizes = [4, 16], strides = [1, 1]} : vector<4x32xf32> to vector<4x16xf32>
    %cst_39 = arith.constant dense<0.000000e+00> : vector<4x16xf32>
    %96 = tpu.matmul %95, %94, %cst_39 {dimension_numbers = #tpu.dot_dimension_numbers<[1], [1], [0], [0], [0, 0, 1, 0], [], []>} : vector<4x16xf32>, vector<16x16xf32>, vector<4x16xf32> -> vector<4x16xf32>
    %97 = vector.extract_strided_slice %79 {offsets = [0, 16], sizes = [4, 16], strides = [1, 1]} : vector<4x32xf32> to vector<4x16xf32>
    %cst_40 = arith.constant dense<0.000000e+00> : vector<4x16xf32>
    %98 = tpu.matmul %97, %94, %cst_40 {dimension_numbers = #tpu.dot_dimension_numbers<[1], [1], [0], [0], [0, 0, 1, 0], [], []>} : vector<4x16xf32>, vector<16x16xf32>, vector<4x16xf32> -> vector<4x16xf32>
    %99 = tpu.concatenate %96, %98 in 1 : vector<4x16xf32>, vector<4x16xf32> -> vector<4x32xf32>
    %c320 = arith.constant 320 : index
    %c0_41 = arith.constant 0 : index
    %100 = vector.load %arg1[%c320, %c0_41] : memref<352x128xf32, #tpu.memory_space<vmem>>, vector<4x4xf32>
    %cst_42 = arith.constant dense<0.000000e+00> : vector<4x32xf32>
    %101 = tpu.matmul %100, %99, %cst_42 {dimension_numbers = #tpu.dot_dimension_numbers<[1], [0], [0], [1], [0, 0, 1, 1], [], []>} : vector<4x4xf32>, vector<4x32xf32>, vector<4x32xf32> -> vector<4x32xf32>
    %c328 = arith.constant 328 : index
    %c0_43 = arith.constant 0 : index
    %102 = vector.load %arg1[%c328, %c0_43] : memref<352x128xf32, #tpu.memory_space<vmem>>, vector<4x1xf32>
    %103 = vector.broadcast %102 : vector<4x1xf32> to vector<4x32xf32>
    %104 = arith.addf %101, %103 : vector<4x32xf32>
    %cst_44 = arith.constant 0.000000e+00 : f32
    %105 = vector.broadcast %cst_44 : f32 to vector<4x32xf32>
    %106 = arith.maximumf %104, %105 : vector<4x32xf32>
    %107 = tpu.concatenate %79, %106 in 0 : vector<4x32xf32>, vector<4x32xf32> -> vector<8x32xf32>
    %c336 = arith.constant 336 : index
    %c0_45 = arith.constant 0 : index
    %108 = vector.load %arg1[%c336, %c0_45] : memref<352x128xf32, #tpu.memory_space<vmem>>, vector<4x8xf32>
    %cst_46 = arith.constant dense<0.000000e+00> : vector<4x32xf32>
    %109 = tpu.matmul %108, %107, %cst_46 {dimension_numbers = #tpu.dot_dimension_numbers<[1], [0], [0], [1], [0, 0, 1, 1], [], []>} : vector<4x8xf32>, vector<8x32xf32>, vector<4x32xf32> -> vector<4x32xf32>
    %c344 = arith.constant 344 : index
    %c0_47 = arith.constant 0 : index
    %110 = vector.load %arg1[%c344, %c0_47] : memref<352x128xf32, #tpu.memory_space<vmem>>, vector<4x1xf32>
    %111 = vector.broadcast %110 : vector<4x1xf32> to vector<4x32xf32>
    %112 = arith.addf %109, %111 : vector<4x32xf32>
    %113 = arith.negf %112 : vector<4x32xf32>
    %114 = math.exp %113 : vector<4x32xf32>
    %cst_48 = arith.constant 1.000000e+00 : f32
    %115 = vector.broadcast %cst_48 : f32 to vector<4x32xf32>
    %116 = arith.addf %115, %114 : vector<4x32xf32>
    %117 = arith.divf %115, %116 : vector<4x32xf32>
    %118 = arith.mulf %117, %79 : vector<4x32xf32>
    %cst_49 = arith.constant 1.000000e+00 : f32
    %119 = vector.broadcast %cst_49 : f32 to vector<4x32xf32>
    %120 = arith.subf %119, %117 : vector<4x32xf32>
    %121 = arith.mulf %120, %106 : vector<4x32xf32>
    %122 = arith.addf %118, %121 : vector<4x32xf32>
    %c0_50 = arith.constant 0 : index
    %c0_51 = arith.constant 0 : index
    %123 = vector.load %arg2[%c0_50, %c0_51] : memref<4x32xf32, #tpu.memory_space<vmem>>, vector<4x32xf32>
    tpu.vector_store %arg2[%c0_50, %c0_51], %122 {strides = array<i32>} : memref<4x32xf32, #tpu.memory_space<vmem>>, vector<4x32xf32>,
    return
  }
}

</mosaic_0001>

<bundles_post_ra>
// kernel: forward.1
= control target key start
LH: loop header
LB: loop body
LE: loop exit
PB: predicated region body
PF: predicated region fallthrough
CT: control target
= control target key end

     0   :  { %7 = vsyncpa [#allocation3], 0  ;;  %s1351_s9 = smov [#allocation2]   ;;  %s1481_s0 = inlined_call_operand.vmem [shape: f32[8,32], index: 0, kind: input, shape index: {}]   ;;  %s1482_s1 = inlined_call_operand.hbm [shape: f32[352,128], index: 1, kind: input, shape index: {}]   ;;  %s1483_s2 = inlined_call_operand.vmem [shape: f32[4,32], index: 2, kind: output, shape index: {}]  }
   0x1   :  { %s15_s10 = sshll.u32 %s1351_s9, 4  ;;  %s16_s10 = int_to_ptr.vmem [resolvable:$true] %s15_s10 }
   0x2   :  { %s1337_s11 = scalar_lea.vmem %s16_s10, 5632  ;;  %p1342_p1 = scmp.lt.s32.totalorder %s16_s10, %s16_s10 }
   0x3   :  { %p1338_p0 = scmp.ne.s32.totalorder %s16_s10, %s1337_s11  ;;  %p1343_p2 = scmp.lt.s32.totalorder %s1337_s11, %s1337_s11 }
   0x5   :  { %p1344_p3 = por %p1343_p2, %p1342_p1 }
   0x7   :  { %p1345_p4 = pnand %p1344_p3, %p1338_p0 }
   0x9   :  { %1348 = shalt.err (!%p1345_p4)
}
   0xa   :  { %s1352_s12 = smov 128   ;;  %s1353_s13 = smov 8  }
   0xb   :  { %21 = dma.hbm_to_vmem [thread:$0]  %s1482_s1, 5632, %s16_s10, [#allocation3], %s1352_s12, %s1352_s12, %s1353_s13  }
   0xc   :  { %1349 = dma.done.wait [#allocation3], 5632  }
   0xd   :  { %1350 = vsyncadd [#allocation3], 4294961664  ;;  %v1354_v0 = vmov 0.0   ;;  %vm1355_vm0 = vmmov 0   ;;  %v1356_v1 = vmov 0   ;;  %vm28_vm1 = vcmask 261120  }
   0xe   :  { %1195 = vmatprep.subr.mxu0 %v1354_v0  ;;  %1197 = vmatprep.mubr.msk.f32.mxu0 %vm1355_vm0, %v1354_v0  ;;  %v25_v2 = vld [vmem:[%s1481_s0] sm:$0xff]  ;;  %v69_v4 = vld [vmem:[#allocation2 + $0x18] sm:$0xff]  ;;  %v1397_v34 = vld [vmem:[#allocation2 + $0x8] ss:$0 sm:$0xff]  ;;  %vm75_vm4 = vcmask 64512   ;;  %vm247_vm5 = vcmask 523264  }
   0xf   :  { %1309 = vset.pattern.permute.xlu0 %v1356_v1  ;;  %1200 = vmatprep.subr.mxu1 %v1354_v0  ;;  %v29_v3 = vsel %vm28_vm1, %v25_v2, 0.0  ;;  %v154_v6 = vld [vmem:[#allocation2 + $0x38] sm:$0xff]  ;;  %v1395_v32 = vld [vmem:[#allocation2] ss:$0 sm:$0xff]  ;;  %v68_v37 = vld [vmem:[#allocation2 + $0x10] sm:$0xff]  ;;  %vm752_vm6 = vcmask 130048  }
  0x10   :  { %1208 = vmatprep.mubr.msk.f32.mxu1 %vm1355_vm0, %v1354_v0  ;;  %1310 = vset.pattern.permute.xlu1 %v1356_v1  ;;  %v30_v5 = vrot.slane %v29_v3, 4  ;;  %v323_v7 = vld [vmem:[#allocation2 + $0x98] sm:$0xff]  ;;  %v153_v38 = vld [vmem:[#allocation2 + $0x30] sm:$0xff]  ;;  %v152_v39 = vld [vmem:[#allocation2 + $0x28] sm:$0xff]  ;;  %s1357_s0 = smov 112   ;;  %s1358_s17 = smov 16  }
  0x11   :  { %72 = vperm.xlu0 %1309, %v69_v4   ;;  %1201 = vmatpush3.msra.mxu1 %v154_v6  ;;  %v575_v10 = vld [vmem:[#allocation2 + $0x118] sm:$0xf]  ;;  %v151_v40 = vld [vmem:[#allocation2 + $0x20] sm:$0xff]  ;;  %v239_v43 = vld [vmem:[#allocation2 + $0x70] sm:$0xff]  ;;  %vm944_vm7 = vcmask 1043456   ;;  %vm940_vm8 = vcmask 31744  }
  0x12   :  { %v31_v8 = vadd.f32 %v30_v5, %v29_v3  ;;  %1202 = vmatprep.subr.mxu1 %v1354_v0  ;;  %v241_v41 = vld [vmem:[#allocation2 + $0x80] sm:$0xff]  ;;  %v240_v42 = vld [vmem:[#allocation2 + $0x78] sm:$0xff]  ;;  %v238_v44 = vld [vmem:[#allocation2 + $0x68] sm:$0xff]  ;;  %vm1113_vm9 = vcmask 257024  }
  0x13   :  { %1203 = vmatpush3.msra.mxu1 %v153_v38  ;;  %v237_v45 = vld [vmem:[#allocation2 + $0x60] sm:$0xff]  ;;  %v236_v52 = vld [vmem:[#allocation2 + $0x58] sm:$0xff]  ;;  %v235_v53 = vld [vmem:[#allocation2 + $0x50] sm:$0xff] }
  0x14   :  { %v32_v9 = vrot.slane %v31_v8, 2  ;;  %1204 = vmatprep.subr.mxu1 %v1354_v0  ;;  %v234_v54 = vld [vmem:[#allocation2 + $0x48] sm:$0xff]  ;;  %v1123_v55 = vld [vmem:[#allocation2 + $0x40] ss:$0 sm:$0xff]  ;;  %v407_v3 = vld [vmem:[#allocation2 + $0xb8] sm:$0xff] }
  0x15   :  { %326 = vperm.xlu0 %1309, %v323_v7   ;;  %1205 = vmatpush3.msra.mxu1 %v152_v39  ;;  %v1125_v60 = vld [vmem:[#allocation2 + $0x88] ss:$0 sm:$0xff]  ;;  %v406_v4 = vld [vmem:[#allocation2 + $0xb0] sm:$0xff]  ;;  %v404_v6 = vld [vmem:[#allocation2 + $0xa0] sm:$0xff] }
  0x16   :  { %v33_v11 = vadd.f32 %v32_v9, %v31_v8  ;;  %1206 = vmatprep.subr.mxu1 %v1354_v0  ;;  %v405_v5 = vld [vmem:[#allocation2 + $0xa8] sm:$0xff]  ;;  %v494_v7 = vld [vmem:[#allocation2 + $0x100] sm:$0xff]  ;;  %v493_v8 = vld [vmem:[#allocation2 + $0xf8] sm:$0xff] }
  0x17   :  { %1207 = vmatpush3.msra.mxu1 %v151_v40  ;;  %v492_v9 = vld [vmem:[#allocation2 + $0xf0] sm:$0xff]  ;;  %v660_v39 = vld [vmem:[#allocation2 + $0x128] sm:$0xff] }
  0x18   :  { %v34_v12 = vrot.slane %v33_v11, 1  ;;  %1230 = vmatprep.subr.mxu1 %v1354_v0  ;;  %v661_v38 = vld [vmem:[#allocation2 + $0x130] sm:$0xff] }
  0x19   :  { %578 = vperm.xlu0 %1309, %v575_v10   ;;  %v491_v10 = vld [vmem:[#allocation2 + $0xe8] sm:$0xff] }
  0x1a   :  { %v35_v13 = vadd.f32 %v34_v12, %v33_v11  ;;  %v490_v11 = vld [vmem:[#allocation2 + $0xe0] sm:$0xff] }
  0x1c   :  { %v1388_v14 = vmul.f32 0.125, %v35_v13 }
  0x1e   :  { %v38_v15 = vsub.f32 %v25_v2, %v1388_v14  ;;  %v322_v2 = vld [vmem:[#allocation2 + $0x90] sm:$0xff] }
  0x20   :  { %v39_v16 = vmul.f32 %v38_v15, %v38_v15 }
  0x22   :  { %v40_v17 = vsel %vm28_vm1, %v39_v16, 0.0 }
  0x23   :  { %v41_v18 = vrot.slane %v40_v17, 4 }
  0x25   :  { %v42_v19 = vadd.f32 %v41_v18, %v40_v17 }
  0x27   :  { %v43_v20 = vrot.slane %v42_v19, 2 }
  0x29   :  { %v44_v21 = vadd.f32 %v43_v20, %v42_v19  ;;  %v489_v19 = vld [vmem:[#allocation2 + $0xd8] sm:$0xff]  ;;  %v488_v20 = vld [vmem:[#allocation2 + $0xd0] sm:$0xff] }
  0x2b   :  { %v45_v22 = vrot.slane %v44_v21, 1 }
  0x2d   :  { %v46_v23 = vadd.f32 %v45_v22, %v44_v21  ;;  %v487_v21 = vld [vmem:[#allocation2 + $0xc8] sm:$0xff]  ;;  %v1128_v22 = vld [vmem:[#allocation2 + $0xc0] ss:$0 sm:$0xff] }
  0x2f   :  { %v47_v24 = vmul.f32 0.125, %v46_v23 }
  0x31   :  { %v48_v25 = vadd.f32 1e-05, %v47_v24 }
  0x33   :  { %1311 = vrsqrt.f32 %v48_v25  ;;  %vm51_vm2 = vcmp.eq.f32.partialorder %v48_v25, inf  ;;  %v54_v27 = vand.u32 2147483648, %v48_v25  ;;  %vm53_vm3 = vcmp.eq.f32.partialorder %v48_v25, 0.0 }
  0x40   :  { %v1312_v26 = vpop.eup %1311 }
  0x41   :  { %v50_v28 = vmul.f32 %v1312_v26, %v48_v25 }
  0x43   :  { %v52_v29 = vsel %vm51_vm2, %v48_v25, %v50_v28 }
  0x44   :  { %v1392_v30 = vsel %vm53_vm3, %v54_v27, %v52_v29  ;;  %v1130_v27 = vld [vmem:[#allocation2 + $0x108] ss:$0 sm:$0xff] }
  0x45   :  { %1313 = vrcp.f32 %v1392_v30 }
  0x52   :  { %v1314_v31 = vpop.eup %1313 }
  0x53   :  { %v57_v33 = vmul.f32 %v1314_v31, %v38_v15 }
  0x55   :  { %v62_v35 = vmul.f32 %v1395_v32, %v57_v33 }
  0x57   :  { %v67_v36 = vadd.f32 %v1397_v34, %v62_v35  ;;  %v574_v35 = vld [vmem:[#allocation2 + $0x110] sm:$0xf] }
  0x59   :  { %1196 = vmatpush3.msra.mxu0 %v67_v36 }
  0x5a   :  { %1198 = vmatmul.mubr.msk.f32.vlgmr.msra.gmra.mxu0 %vm75_vm4, %v68_v37  ;;  %1211 = vmatprep.subr.mxu0 %v1354_v0  ;;  %v659_v37 = vld [vmem:[#allocation2 + $0x120] sm:$0xff] }
  0x5b   :  { %1227 = vmatprep.mubr.msk.f32.mxu0 %vm1355_vm0, %v1354_v0  ;;  %1212 = vmatpush3.msra.mxu0 %v241_v41 }
  0x5c   :  { %1213 = vmatprep.subr.mxu0 %v1354_v0 }
  0x5d   :  { %1214 = vmatpush3.msra.mxu0 %v240_v42 }
  0x5e   :  { %1215 = vmatprep.subr.mxu0 %v1354_v0 }
  0x5f   :  { %1216 = vmatpush3.msra.mxu0 %v239_v43 }
  0x60   :  { %1217 = vmatprep.subr.mxu0 %v1354_v0 }
  0x61   :  { %1218 = vmatpush3.msra.mxu0 %v238_v44 }
  0x62   :  { %1219 = vmatprep.subr.mxu0 %v1354_v0 }
  0x63   :  { %1220 = vmatpush3.msra.mxu0 %v237_v45 }
  0x64   :  { %1221 = vmatprep.subr.mxu0 %v1354_v0 }
  0x65   :  { %1222 = vmatpush3.msra.mxu0 %v236_v52 }
  0x66   :  { %1223 = vmatprep.subr.mxu0 %v1354_v0 }
  0x67   :  { %1224 = vmatpush3.msra.mxu0 %v235_v53 }
  0x68   :  { %1225 = vmatprep.subr.mxu0 %v1354_v0 }
  0x69   :  { %1226 = vmatpush3.msra.mxu0 %v234_v54 }
  0x6a   :  { %1246 = vmatprep.subr.mxu0 %v1354_v0 }
  0x8c   :  { %v73_v46 = vpop.permute.xlu0 %72 }
  0x90   :  { %v327_v12 = vpop.permute.xlu0 %326 }
 0x11a   :  { %v145_v47 = vpop.f32.mrf.mxu0 }
 0x11b   :  { %v146_v48 = vadd.f32 %v145_v47, %v73_v46 }
 0x11c   :  { %v1199_v49 = vpop.f32.mrf.mxu0 }
 0x11d   :  { %v149_v50 = vmax.f32 %v146_v48, 0.0 }
 0x11f   :  { %v150_v51 = vadd.f32 %v149_v50, %v67_v36  ;;  %v662_v36 = vld [vmem:[#allocation2 + $0x138] sm:$0xff] }
 0x121   :  { %1209 = vmatmul.mubr.msk.f32.vlgmr.msra.gmra.mxu1 %vm28_vm1, %v150_v51 }
 0x122   :  { %1232 = vmatprep.mubr.msk.f32.mxu1 %vm1355_vm0, %v1354_v0 }
 0x1e1   :  { %v229_v56 = vpop.f32.mrf.mxu1 }
 0x1e2   :  { %v230_v57 = vadd.f32 %v1123_v55, %v229_v56  ;;  %v579_v55 = vpop.permute.xlu0 %578 }
 0x1e3   :  { %v1210_v58 = vpop.f32.mrf.mxu1 }
 0x1e4   :  { %v233_v59 = vmax.f32 %v230_v57, 0.0 }
 0x1e6   :  { %1228 = vmatmul.mubr.msk.f32.vlgmr.msra.gmra.mxu0 %vm247_vm5, %v233_v59 }
 0x1e7   :  { %1262 = vmatprep.mubr.msk.f32.mxu0 %vm1355_vm0, %v1354_v0  ;;  %1247 = vmatpush3.msra.mxu0 %v494_v7 }
 0x1e8   :  { %1248 = vmatprep.subr.mxu0 %v1354_v0 }
 0x1e9   :  { %1249 = vmatpush3.msra.mxu0 %v493_v8 }
 0x1ea   :  { %1250 = vmatprep.subr.mxu0 %v1354_v0 }
 0x1eb   :  { %1251 = vmatpush3.msra.mxu0 %v492_v9  ;;  %v934_v9 = vld [vmem:[#allocation2 + $0x148] sm:$0xf] }
 0x1ec   :  { %1252 = vmatprep.subr.mxu0 %v1354_v0 }
 0x1ed   :  { %1253 = vmatpush3.msra.mxu0 %v491_v10  ;;  %v1024_v10 = vld [vmem:[#allocation2 + $0x158] sm:$0xf] }
 0x1ee   :  { %1254 = vmatprep.subr.mxu0 %v1354_v0 }
 0x1ef   :  { %1255 = vmatpush3.msra.mxu0 %v490_v11 }
 0x1f0   :  { %1256 = vmatprep.subr.mxu0 %v1354_v0 }
 0x1f1   :  { %1257 = vmatpush3.msra.mxu0 %v489_v19 }
 0x1f2   :  { %1258 = vmatprep.subr.mxu0 %v1354_v0 }
 0x1f3   :  { %1259 = vmatpush3.msra.mxu0 %v488_v20  ;;  %v1023_v20 = vld [vmem:[#allocation2 + $0x150] sm:$0xf] }
 0x1f4   :  { %1260 = vmatprep.subr.mxu0 %v1354_v0 }
 0x1f5   :  { %1261 = vmatpush3.msra.mxu0 %v487_v21 }
 0x1f6   :  { %1284 = vmatprep.subr.mxu0 %v1354_v0 }
 0x2a6   :  { %v317_v61 = vpop.f32.mrf.mxu0 }
 0x2a7   :  { %v318_v62 = vadd.f32 %v1125_v60, %v317_v61 }
 0x2a8   :  { %v1229_v63 = vpop.f32.mrf.mxu0 }
 0x2a9   :  { %v321_v1 = vadd.f32 %v318_v62, %v150_v51 }
 0x2ab   :  { %1231 = vmatpush3.msra.mxu1 %v321_v1 }
 0x2ac   :  { %1233 = vmatmul.mubr.msk.f32.vlgmr.msra.gmra.mxu1 %vm75_vm4, %v322_v2  ;;  %1235 = vmatprep.subr.mxu1 %v1354_v0 }
 0x2ad   :  { %1243 = vmatprep.mubr.msk.f32.mxu1 %vm1355_vm0, %v1354_v0  ;;  %1236 = vmatpush3.msra.mxu1 %v407_v3 }
 0x2ae   :  { %1237 = vmatprep.subr.mxu1 %v1354_v0 }
 0x2af   :  { %1238 = vmatpush3.msra.mxu1 %v406_v4 }
 0x2b0   :  { %1239 = vmatprep.subr.mxu1 %v1354_v0 }
 0x2b1   :  { %1240 = vmatpush3.msra.mxu1 %v405_v5 }
 0x2b2   :  { %1241 = vmatprep.subr.mxu1 %v1354_v0 }
 0x2b3   :  { %1242 = vmatpush3.msra.mxu1 %v404_v6 }
 0x2b4   :  { %1265 = vmatprep.subr.mxu1 %v1354_v0 }
 0x36c   :  { %v398_v13 = vpop.f32.mrf.mxu1 }
 0x36d   :  { %v399_v15 = vadd.f32 %v398_v13, %v327_v12  ;;  %v933_v12 = vld [vmem:[#allocation2 + $0x140] sm:$0xf] }
 0x36e   :  { %v1234_v16 = vpop.f32.mrf.mxu1 }
 0x36f   :  { %v402_v17 = vmax.f32 %v399_v15, 0.0 }
 0x371   :  { %v403_v18 = vadd.f32 %v402_v17, %v321_v1 }
 0x373   :  { %1244 = vmatmul.mubr.msk.f32.vlgmr.msra.gmra.mxu1 %vm28_vm1, %v403_v18 }
 0x374   :  { %1267 = vmatprep.mubr.msk.f32.mxu1 %vm1355_vm0, %v1354_v0 }
 0x433   :  { %v482_v23 = vpop.f32.mrf.mxu1 }
 0x434   :  { %v483_v24 = vadd.f32 %v1128_v22, %v482_v23 }
 0x435   :  { %v1245_v25 = vpop.f32.mrf.mxu1 }
 0x436   :  { %v486_v26 = vmax.f32 %v483_v24, 0.0 }
 0x438   :  { %1263 = vmatmul.mubr.msk.f32.vlgmr.msra.gmra.mxu0 %vm247_vm5, %v486_v26 }
 0x439   :  { %1288 = vmatprep.mubr.msk.f32.mxu0 %vm1355_vm0, %v1354_v0 }
 0x4f8   :  { %v569_v28 = vpop.f32.mrf.mxu0 }
 0x4f9   :  { %v570_v29 = vadd.f32 %v1130_v27, %v569_v28 }
 0x4fa   :  { %v1264_v31 = vpop.f32.mrf.mxu0 }
 0x4fb   :  { %v573_v33 = vadd.f32 %v570_v29, %v403_v18 }
 0x4fd   :  { %1266 = vmatpush3.msra.mxu1 %v573_v33 }
 0x4fe   :  { %1268 = vmatmul.mubr.msk.f32.vlgmr.msra.gmra.mxu1 %vm75_vm4, %v574_v35  ;;  %1270 = vmatprep.subr.msk.mxu1 %vm75_vm4, %v662_v36 }
 0x4ff   :  { %1271 = vmatpush3.xpose.msk.msra.mxu1 %vm75_vm4, %v662_v36  ;;  %1274 = vmatprep.mubr.msk.f32.mxu1 %vm75_vm4, %v659_v37 }
 0x500   :  { %1272 = vmatprep.subr.msk.mxu1 %vm75_vm4, %v661_v38 }
 0x503   :  { %1273 = vmatpush3.xpose.msk.msra.mxu1 %vm75_vm4, %v661_v38 }
 0x504   :  { %1277 = vmatprep.subr.mxu1 %v1354_v0 }
 0x506   :  { %1275 = vmatmul.mubr.msk.f32.vlgmr.msra.gmra.mxu1 %vm75_vm4, %v660_v39 }
 0x507   :  { %1281 = vmatprep.mubr.msk.f32.mxu1 %vm1355_vm0, %v1354_v0 }
 0x5be   :  { %v650_v40 = vpop.f32.mrf.mxu1 }
 0x5bf   :  { %v651_v56 = vadd.f32 %v650_v40, %v579_v55 }
 0x5c0   :  { %v1269_v41 = vpop.f32.mrf.mxu1 }
 0x5c1   :  { %v654_v59 = vsub.f32 %v651_v56, %v1397_v34 }
 0x5c6   :  { %v1276_v42 = vpop.f32.mrf.mxu1 }
 0x5c7   :  { %v751_v43 = vmax.f32 %v1276_v42, 0.0 }
 0x5c8   :  { %v741_v44 = vpop.f32.mrf.mxu1 }
 0x5c9   :  { %v750_v45 = vmax.f32 %v741_v44, 0.0  ;;  %v756_v46 = vsel %vm752_vm6, %v751_v43, -inf }
 0x5ca   :  { %757 = vmax.xlane.f32.xlu1 %v756_v46 }
 0x5cb   :  { %v753_v47 = vsel %vm752_vm6, %v750_v45, -inf }
 0x5ce   :  { %754 = vmax.xlane.f32.xlu1 %v753_v47 }
 0x653   :  { %v758_v48 = vpop.xlane.xlu1 %757 }
 0x654   :  { %v760_v49 = vsub.f32 %v751_v43, %v758_v48 }
 0x656   :  { %v763_v50 = vmul.f32 1.442695, %v760_v49 }
 0x657   :  { %v755_v51 = vpop.xlane.xlu1 %754 }
 0x658   :  { %1315 = vpow2.f32 %v763_v50  ;;  %v759_v52 = vsub.f32 %v750_v45, %v755_v51 }
 0x65a   :  { %v761_v53 = vmul.f32 1.442695, %v759_v52 }
 0x65c   :  { %1317 = vpow2.f32 %v761_v53 }
 0x65d   :  { %1319 = vrcp.f32 %v1395_v32 }
 0x665   :  { %v1316_v54 = vpop.eup %1315 }
 0x666   :  { %v768_v57 = vsel %vm752_vm6, %v1316_v54, 0.0 }
 0x667   :  { %769 = vadd.xlane.f32.xlu1 %v768_v57 }
 0x669   :  { %v1318_v58 = vpop.eup %1317 }
 0x66a   :  { %v765_v60 = vsel %vm752_vm6, %v1318_v58, 0.0  ;;  %v1320_v61 = vpop.eup %1319 }
 0x66b   :  { %766 = vadd.xlane.f32.xlu0 %v765_v60  ;;  %v656_v62 = vmul.f32 %v1320_v61, %v654_v59 }
 0x66d   :  { %v657_v63 = vmul.f32 %v656_v62, %v1392_v30 }
 0x66f   :  { %v658_v1 = vadd.f32 %v657_v63, %v1388_v14 }
 0x678   :  { %854 = vrot.lane.b32.xlu1 %v658_v1, %s1357_s0 }
 0x6f0   :  { %v770_v32 = vpop.xlane.xlu1 %769 }
 0x6f1   :  { %1321 = vrcp.f32 %v770_v32 }
 0x6f4   :  { %v767_v2 = vpop.xlane.xlu0 %766  ;;  %v855_v14 = vpop.permute.xlu1 %854 }
 0x6f5   :  { %1323 = vrcp.f32 %v767_v2 }
 0x6fe   :  { %v1322_v3 = vpop.eup %1321 }
 0x6ff   :  { %v774_v4 = vmul.f32 %v1322_v3, %v1316_v54 }
 0x701   :  { %1278 = vmatpush3.xpose.msk.msra.mxu1 %vm752_vm6, %v774_v4  ;;  %1285 = vmatpush3.xpose.msk.msra.mxu0 %vm752_vm6, %v774_v4 }
 0x702   :  { %v1324_v34 = vpop.eup %1323  ;;  %1279 = vmatprep.subr.mxu1 %v1354_v0  ;;  %1286 = vmatprep.subr.mxu0 %v1354_v0 }
 0x703   :  { %v773_v30 = vmul.f32 %v1324_v34, %v1318_v58 }
 0x705   :  { %1280 = vmatpush3.xpose.msk.msra.mxu1 %vm752_vm6, %v773_v30  ;;  %1287 = vmatpush3.xpose.msk.msra.mxu0 %vm752_vm6, %v773_v30 }
 0x706   :  { %1291 = vmatprep.subr.mxu1 %v1354_v0  ;;  %1296 = vmatprep.subr.mxu0 %v1354_v0 }
 0x708   :  { %1282 = vmatmul.mubr.msk.f32.vlgmr.msra.gmra.mxu1 %vm752_vm6, %v658_v1  ;;  %1289 = vmatmul.mubr.msk.f32.vlgmr.msra.gmra.mxu0 %vm752_vm6, %v855_v14 }
 0x709   :  { %1293 = vmatprep.mubr.msk.f32.mxu1 %vm1355_vm0, %v1354_v0  ;;  %1298 = vmatprep.mubr.msk.f32.mxu0 %vm1355_vm0, %v1354_v0 }
 0x7c8   :  { %v850_v5 = vpop.f32.mrf.mxu1  ;;  %v924_v6 = vpop.f32.mrf.mxu0 }
 0x7c9   :  { %929 = vrot.lane.b32.xlu1 %v924_v6, %s1358_s17 }
 0x7ca   :  { %v1283_v7 = vpop.f32.mrf.mxu1  ;;  %v1290_v8 = vpop.f32.mrf.mxu0 }
 0x7cd   :  { %937 = vperm.xlu1 %1310, %v934_v9  }
 0x7d1   :  { %1027 = vperm.xlu1 %1310, %v1024_v10  }
 0x83b   :  { %v930_v11 = vpop.permute.xlu1 %929 }
 0x83c   :  { %v932_v13 = vsel %vm752_vm6, %v850_v5, %v930_v11 }
 0x83d   :  { %1292 = vmatpush3.msk.msra.mxu1 %vm944_vm7, %v932_v13 }
 0x83e   :  { %1294 = vmatmul.mubr.msk.f32.vlgmr.msra.gmra.mxu1 %vm940_vm8, %v933_v12 }
 0x848   :  { %v938_v15 = vpop.permute.xlu1 %937 }
 0x84c   :  { %v1028_v22 = vpop.permute.xlu1 %1027 }
 0x8fe   :  { %v1014_v0 = vpop.f32.mrf.mxu1 }
 0x8ff   :  { %v1015_v16 = vadd.f32 %v1014_v0, %v938_v15 }
 0x900   :  { %v1295_v17 = vpop.f32.mrf.mxu1 }
 0x901   :  { %v1018_v18 = vmax.f32 %v1015_v16, 0.0 }
 0x903   :  { %v1020_v19 = vrot.slane %v1018_v18, 4 }
 0x905   :  { %v1022_v21 = vsel %vm944_vm7, %v658_v1, %v1020_v19 }
 0x906   :  { %1297 = vmatpush3.msra.mxu0 %v1022_v21 }
 0x907   :  { %1299 = vmatmul.mubr.msk.f32.vlgmr.msra.gmra.mxu0 %vm75_vm4, %v1023_v20 }
 0x9c7   :  { %v1099_v23 = vpop.f32.mrf.mxu0 }
 0x9c8   :  { %v1100_v24 = vadd.f32 %v1099_v23, %v1028_v22 }
 0x9c9   :  { %v1300_v25 = vpop.f32.mrf.mxu0 }
 0x9ca   :  { %v1146_v26 = vmul.f32 -1.442695, %v1100_v24 }
 0x9cc   :  { %1325 = vpow2.f32 %v1146_v26 }
 0x9d9   :  { %v1326_v27 = vpop.eup %1325 }
 0x9da   :  { %v1106_v28 = vadd.f32 1.0, %v1326_v27 }
 0x9dc   :  { %1327 = vrcp.f32 %v1106_v28 }
 0x9e9   :  { %v1328_v29 = vpop.eup %1327 }
 0x9ea   :  { %v1110_v31 = vsub.f32 1.0, %v1328_v29  ;;  %v1109_v33 = vmul.f32 %v1328_v29, %v658_v1 }
 0x9ec   :  { %v1111_v35 = vmul.f32 %v1110_v31, %v1018_v18 }
 0x9ee   :  { %v1112_v36 = vadd.f32 %v1111_v35, %v1109_v33 }
 0x9f0   :  { %1114 = vst.msk [vmem:[%s1483_s2] sm:$0xf] %vm1113_vm9, %v1112_v36 }
 0x9f1   :  { %1119 = vsyncpa [#allocation3], 1 }

</bundles_post_ra>
